<compile_context>
chip_gen: v6e
topology: v6e:2x2x1
jax: 0.10.0
libtpu: 0.0.40
codegen_flags: <defaults>
</compile_context>

<pallas_src>
import jax
import jax.numpy as jnp
from jax.experimental import pallas as pl
from jax.experimental.pallas import tpu as pltpu


# ---- "params" that the original module pulls from a global config ------------
DENSE_SAMPLING_L = 16        # params.dense_sampling_L
GAUSSIAN_SAMPLING_STD = 2.0  # params.gaussian_sampling_std

_GROUP = 16                  # rows fused per grouped row -> lane-dense G*K output
_MAX_TILE_ROWS = 4096        # keep double-buffered tiles inside v5e's 16 MiB scoped VMEM


def _cdiv(a, b):
    return -(-a // b)


def _round_up(a, b):
    return _cdiv(a, b) * b


def _choose_tile(M_g, tile_rows):
    """Pick (TM, n_tiles) for the grouped-row axis.

    - TM is a multiple of 8 (sublane) unless a single block covers the full array.
    - Tiles are balanced (no near-empty trailing tile from rounding M up to TM).
    - At least 2 tiles whenever there is enough work, so the "parallel" grid axis
      can be split across v7x's two TensorCores.
    """
    tile_rows = max(8, min(int(tile_rows), _MAX_TILE_ROWS))
    if M_g < 16:
        return M_g, 1                      # single block == full array (no 8-row constraint)
    n = max(_cdiv(M_g, tile_rows), 2)      # >= 2 tiles -> both v7x TCs get work
    TM = _round_up(_cdiv(M_g, n), 8)       # balanced tile size, sublane-aligned
    n = _cdiv(M_g, TM)                     # re-derive after rounding; last tile may be partial
    return TM, n


def _sampling_kernel(x_ref, g_ref, o_ref):
    # x_ref: (TM, G*L)  grouped dense samples for TM grouped rows
    # g_ref: (G*L, G*K) block-diagonal Gaussian matrix (constant across tiles)
    # o_ref: (TM, G*K)  lane-dense Gaussian-weighted sums
    o_ref[...] = jnp.dot(x_ref[...], g_ref[...],
                         preferred_element_type=jnp.float32)


def _gaussian_matrix(weight, L, std):
    t = jnp.arange(1, L + 1, dtype=jnp.float32)                        # (L,)
    w = weight.astype(jnp.float32)                                     # (K,)
    return jnp.exp(-((t[:, None] - w[None, :]) ** 2) / (std ** 2))     # (L, K)


def sampling_layer(x, weight, *, num_of_adc_p, num_samples_L_tilde,
                   dense_sampling_L=DENSE_SAMPLING_L,
                   gaussian_sampling_std=GAUSSIAN_SAMPLING_STD,
                   tile_rows=2048):
    """Pallas equivalent of SamplingLayer.forward.

    x:      (B, num_of_adc_p * dense_sampling_L) float32
    weight: (num_samples_L_tilde,) float32
    returns (B, num_of_adc_p * num_samples_L_tilde) float32
    """
    B = x.shape[0]
    P, L, K = num_of_adc_p, dense_sampling_L, num_samples_L_tilde
    G = _GROUP
    std = float(gaussian_sampling_std)
    BP = B * P

    x = x.astype(jnp.float32)
    g_small = _gaussian_matrix(weight, L, std)             # (L, K), built once (hoisted)

    main = (BP // G) * G                                   # rows handled by the kernel
    tail = BP - main                                       # ragged remainder (< G rows)

    x2d = x.reshape(BP, L)                                 # pure bitcast

    out_main = None
    if main > 0:
        M_g = main // G
        # Block-diagonal Gaussian: kron(I_G, g_small) -> (G*L, G*K). Exact.
        g_blk = jnp.kron(jnp.eye(G, dtype=jnp.float32), g_small)
        x_main = x2d if tail == 0 else x2d[:main, :]
        x_grp = x_main.reshape(M_g, G * L)                 # bitcast on the aligned path

        TM, n_tiles = _choose_tile(M_g, tile_rows)

        cost = pl.CostEstimate(
            flops=2 * main * L * K,                        # block-diagonal nonzeros only
            transcendentals=0,
            bytes_accessed=4 * (main * L + main * K + (G * L) * (G * K)),
        )

        out_grp = pl.pallas_call(
            _sampling_kernel,
            out_shape=jax.ShapeDtypeStruct((M_g, G * K), jnp.float32),
            grid=(n_tiles,),
            in_specs=[
                pl.BlockSpec((TM, G * L), lambda i: (i, 0)),
                pl.BlockSpec((G * L, G * K), lambda i: (0, 0)),  # constant, stays resident
            ],
            out_specs=pl.BlockSpec((TM, G * K), lambda i: (i, 0)),
            compiler_params=pltpu.CompilerParams(
                dimension_semantics=("parallel",),          # shard tiles across v7x TCs
                allow_input_fusion=[True, False],           # fuse reshape/slice producer
            ),
            cost_estimate=cost,
        )(x_grp, g_blk)

        out_main = out_grp.reshape(main, K)                 # bitcast
        if tail == 0:
            # Aligned fast path: zero extra HBM copies end-to-end.
            return out_main.reshape(B, P * K)               # bitcast

    # Ragged tail (< 16 original rows): tiny dense matmul, negligible cost.
    out_tail = jnp.dot(x2d[main:, :], g_small)              # (tail, K)
    if out_main is None:
        out2d = out_tail
    else:
        out2d = jnp.concatenate([out_main, out_tail], axis=0)
    return out2d.reshape(B, P * K)


def _reference(x, weight, *, num_of_adc_p, num_samples_L_tilde,
               dense_sampling_L=DENSE_SAMPLING_L,
               gaussian_sampling_std=GAUSSIAN_SAMPLING_STD):
    """Pure-JAX re-implementation of the PyTorch loop, for verification."""
    B = x.shape[0]
    P, L, K = num_of_adc_p, dense_sampling_L, num_samples_L_tilde
    g = _gaussian_matrix(weight, L, float(gaussian_sampling_std))       # (L, K)
    out = jnp.einsum("bpl,lk->bpk", x.reshape(B, P, L).astype(jnp.float32), g)
    return out.reshape(B, P * K)


if __name__ == "__main__":
    num_of_adc_p = 4
    num_samples_L_tilde = 8
    L = DENSE_SAMPLING_L

    # Deterministic parameter init, as in the module: linspace(0, L, K+2)[1:-1]
    start_samples = jnp.linspace(0.0, float(L), num_samples_L_tilde + 2,
                                 dtype=jnp.float32)
    weight = start_samples[1:-1]                           # (K,)

    def run_case(batch, seed, **kw):
        x = jax.random.normal(jax.random.PRNGKey(seed),
                              (batch, num_of_adc_p * L), dtype=jnp.float32)
        out = jax.block_until_ready(
            sampling_layer(x, weight, num_of_adc_p=num_of_adc_p,
                           num_samples_L_tilde=num_samples_L_tilde, **kw))
        ref = _reference(x, weight, num_of_adc_p=num_of_adc_p,
                         num_samples_L_tilde=num_samples_L_tilde)
        assert out.shape == (batch, num_of_adc_p * num_samples_L_tilde)
        assert jnp.allclose(out, ref, rtol=1e-4, atol=1e-4), f"mismatch batch={batch}"

    # 1) Aligned fast path (B*P % 16 == 0): no pad, no slice, pure bitcasts.
    run_case(batch=8, seed=0)
    # 2) Multi-tile grid with a partial (grid-edge-masked) last block: 18 grouped rows, TM=8.
    run_case(batch=72, seed=1, tile_rows=8)
    # 3) Ragged tail: 36 rows -> 32 via the kernel + 4 via the tiny einsum.
    run_case(batch=9, seed=2)
    # 4) Tiny batch entirely below one group (tail-only path).
    run_case(batch=2, seed=3)

    print("KERNEL_OK")
</pallas_src>

<mosaic_0001>
module attributes {stable_mosaic.version = 11 : i64} {
  func.func @_sampling_kernel(%arg0: i32, %arg1: memref<2x256xf32, #tpu.memory_space<vmem>>, %arg2: memref<256x128xf32, #tpu.memory_space<vmem>>, %arg3: memref<2x128xf32, #tpu.memory_space<vmem>>) attributes {dimension_semantics = [#tpu.dimension_semantics<parallel>], iteration_bounds = array<i64: 1>, scalar_prefetch = 0 : i64, scratch_operands = 0 : i64, tpu.core_type = #tpu.core_type<tc>, window_params = [{transform_indices = @transform_0, window_bounds = array<i64: 2, 256>}, {pipeline_mode = #tpu.pipeline_mode<synchronous>, transform_indices = @transform_1, window_bounds = array<i64: 256, 128>}, {transform_indices = @transform_2, window_bounds = array<i64: 2, 128>}]} {
    %c0 = arith.constant 0 : index
    %c0_0 = arith.constant 0 : index
    %0 = vector.load %arg1[%c0, %c0_0] : memref<2x256xf32, #tpu.memory_space<vmem>>, vector<2x256xf32>
    %c0_1 = arith.constant 0 : index
    %c0_2 = arith.constant 0 : index
    %1 = vector.load %arg2[%c0_1, %c0_2] : memref<256x128xf32, #tpu.memory_space<vmem>>, vector<256x128xf32>
    %cst = arith.constant dense<0.000000e+00> : vector<2x128xf32>
    %2 = tpu.matmul %0, %1, %cst {dimension_numbers = #tpu.dot_dimension_numbers<[1], [0], [0], [1], [0, 0, 1, 1], [], []>} : vector<2x256xf32>, vector<256x128xf32>, vector<2x128xf32> -> vector<2x128xf32>
    %c0_3 = arith.constant 0 : index
    %c0_4 = arith.constant 0 : index
    %3 = vector.load %arg3[%c0_3, %c0_4] : memref<2x128xf32, #tpu.memory_space<vmem>>, vector<2x128xf32>
    tpu.vector_store %arg3[%c0_3, %c0_4], %2 {strides = array<i32>} : memref<2x128xf32, #tpu.memory_space<vmem>>, vector<2x128xf32>,
    return
  }
  func.func @transform_0(%arg0: i32) -> (i32, i32) {
    %c0_i32 = arith.constant 0 : i32
    %c0_i32_0 = arith.constant 0 : i32
    return %arg0, %c0_i32 : i32, i32
  }
  func.func @transform_1(%arg0: i32) -> (i32, i32) {
    %c0_i32 = arith.constant 0 : i32
    %c0_i32_0 = arith.constant 0 : i32
    %c0_i32_1 = arith.constant 0 : i32
    return %c0_i32, %c0_i32_0 : i32, i32
  }
  func.func @transform_2(%arg0: i32) -> (i32, i32) {
    %c0_i32 = arith.constant 0 : i32
    %c0_i32_0 = arith.constant 0 : i32
    return %arg0, %c0_i32 : i32, i32
  }
}

</mosaic_0001>

<bundles_post_ra>
// kernel: tpu_custom_call.1
= control target key start
LH: loop header
LB: loop body
LE: loop exit
PB: predicated region body
PF: predicated region fallthrough
CT: control target
= control target key end

     0   :  { %7 = vsyncpa [#allocation3], 0  ;;  %s305_s0 = inlined_call_operand.hbm [shape: f32[2,256], index: 0, kind: input, shape index: {}]   ;;  %s306_s1 = inlined_call_operand.hbm [shape: f32[256,128], index: 1, kind: input, shape index: {}]   ;;  %s307_s2 = inlined_call_operand.hbm [shape: f32[2,128], index: 2, kind: output, shape index: {}]  }
   0x1   :  { %8 = vsyncpa [#allocation6], 0 }
   0x2   :  { %9 = vsyncpa [#allocation4], 0  ;;  %s276_s9 = smov [#allocation2]   ;;  %s277_s11 = smov [#allocation5]  }
   0x3   :  { %s16_s10 = sshll.u32 %s276_s9, 4  ;;  %s25_s12 = sshll.u32 %s277_s11, 4  ;;  %s17_s10 = int_to_ptr.vmem [resolvable:$true] %s16_s10  ;;  %s26_s12 = int_to_ptr.vmem [resolvable:$true] %s25_s12 }
   0x4   :  { %s218_s13 = scalar_lea.vmem %s17_s10, 64  ;;  %p223_p1 = scmp.lt.s32.totalorder %s17_s10, %s17_s10 }
   0x5   :  { %p219_p0 = scmp.ne.s32.totalorder %s17_s10, %s218_s13  ;;  %p224_p2 = scmp.lt.s32.totalorder %s218_s13, %s218_s13 }
   0x7   :  { %p225_p3 = por %p224_p2, %p223_p1 }
   0x9   :  { %p226_p4 = pnand %p225_p3, %p219_p0 }
   0xb   :  { %229 = shalt.err (!%p226_p4)
}
   0xc   :  { %19 = dma.hbm_to_vmem [thread:$0]  %s305_s0, 64, %s17_s10, [#allocation3]  }
   0xd   :  { %s238_s16 = scalar_lea.vmem %s26_s12, 4096  ;;  %p243_p6 = scmp.lt.s32.totalorder %s26_s12, %s26_s12 }
   0xe   :  { %p239_p5 = scmp.ne.s32.totalorder %s26_s12, %s238_s16  ;;  %p244_p7 = scmp.lt.s32.totalorder %s238_s16, %s238_s16 }
  0x10   :  { %p245_p8 = por %p244_p7, %p243_p6 }
  0x12   :  { %p246_p9 = pnand %p245_p8, %p239_p5 }
  0x14   :  { %249 = shalt.err (!%p246_p9)
}
  0x15   :  { %s278_s17 = smov 128   ;;  %s279_s18 = smov 8  }
  0x16   :  { %31 = dma.hbm_to_vmem [thread:$0]  %s306_s1, 4096, %s26_s12, [#allocation6], %s278_s17, %s278_s17, %s279_s18  }
  0x17   :  { %270 = dma.done.wait [#allocation3], 64  }
  0x18   :  { %271 = vsyncadd [#allocation3], 4294967232 }
  0x19   :  { %272 = dma.done.wait [#allocation6], 4096  }
  0x1a   :  { %273 = vsyncadd [#allocation6], 4294963200  ;;  %v70_v0 = vld [vmem:[#allocation5 + $0xf8] sm:$0xff]  ;;  %v69_v2 = vld [vmem:[#allocation5 + $0xf0] sm:$0xff]  ;;  %s280_s0 = smov [#allocation7]  }
  0x1b   :  { %v54_v1 = vld [vmem:[#allocation5 + $0x78] sm:$0xff]  ;;  %170 = vmatprep.subr.mxu0 %v70_v0  ;;  %v53_v3 = vld [vmem:[#allocation5 + $0x70] sm:$0xff]  ;;  %v68_v4 = vld [vmem:[#allocation5 + $0xe8] sm:$0xff]  ;;  %s159_s1 = sshll.u32 %s280_s0, 4  ;;  %s160_s1 = int_to_ptr.vmem [resolvable:$true] %s159_s1 }
  0x1c   :  { %171 = vmatpush3.msra.mxu0 %v54_v1  ;;  %v52_v5 = vld [vmem:[#allocation5 + $0x68] sm:$0xff]  ;;  %v67_v6 = vld [vmem:[#allocation5 + $0xe0] sm:$0xff]  ;;  %v66_v8 = vld [vmem:[#allocation5 + $0xd8] sm:$0xff]  ;;  %s250_s21 = scalar_lea.vmem %s160_s1, 32  ;;  %p255_p11 = scmp.lt.s32.totalorder %s160_s1, %s160_s1 }
  0x1d   :  { %172 = vmatprep.subr.mxu0 %v69_v2  ;;  %v51_v7 = vld [vmem:[#allocation5 + $0x60] sm:$0xff]  ;;  %v50_v9 = vld [vmem:[#allocation5 + $0x58] sm:$0xff]  ;;  %v65_v10 = vld [vmem:[#allocation5 + $0xd0] sm:$0xff]  ;;  %p251_p10 = scmp.ne.s32.totalorder %s160_s1, %s250_s21  ;;  %p256_p12 = scmp.lt.s32.totalorder %s250_s21, %s250_s21 }
  0x1e   :  { %173 = vmatpush3.msra.mxu0 %v53_v3  ;;  %v49_v11 = vld [vmem:[#allocation5 + $0x50] sm:$0xff]  ;;  %v64_v12 = vld [vmem:[#allocation5 + $0xc8] sm:$0xff]  ;;  %v169_v13 = vld.sshfl [vmem:[#allocation2] sm:$0x33 pattern:$0x76325410] }
  0x1f   :  { %174 = vmatprep.subr.mxu0 %v68_v4  ;;  %v48_v14 = vld [vmem:[#allocation5 + $0x48] sm:$0xff]  ;;  %v79_v15 = vcombine.high %v169_v13, %v169_v13  ;;  %v63_v16 = vld [vmem:[#allocation5 + $0xc0] sm:$0xff]  ;;  %v62_v18 = vld [vmem:[#allocation5 + $0xb8] sm:$0xff]  ;;  %p257_p13 = por %p256_p12, %p255_p11 }
  0x20   :  { %175 = vmatpush3.msra.mxu0 %v52_v5  ;;  %v47_v17 = vld [vmem:[#allocation5 + $0x40] sm:$0xff]  ;;  %v46_v19 = vld [vmem:[#allocation5 + $0x38] sm:$0xff]  ;;  %v61_v20 = vld [vmem:[#allocation5 + $0xb0] sm:$0xff] }
  0x21   :  { %176 = vmatprep.subr.mxu0 %v67_v6  ;;  %146 = vmatprep.mubr.f32.mxu0 %v79_v15  ;;  %v45_v21 = vld [vmem:[#allocation5 + $0x30] sm:$0xff]  ;;  %v60_v22 = vld [vmem:[#allocation5 + $0xa8] sm:$0xff]  ;;  %v59_v24 = vld [vmem:[#allocation5 + $0xa0] sm:$0xff]  ;;  %p258_p0 = pnand %p257_p13, %p251_p10 }
  0x22   :  { %177 = vmatpush3.msra.mxu0 %v51_v7  ;;  %v44_v23 = vld [vmem:[#allocation5 + $0x28] sm:$0xff]  ;;  %v43_v25 = vld [vmem:[#allocation5 + $0x20] sm:$0xff]  ;;  %v58_v26 = vld [vmem:[#allocation5 + $0x98] sm:$0xff] }
  0x23   :  { %178 = vmatprep.subr.mxu0 %v66_v8  ;;  %v42_v27 = vld [vmem:[#allocation5 + $0x18] sm:$0xff]  ;;  %v57_v28 = vld [vmem:[#allocation5 + $0x90] sm:$0xff]  ;;  %v56_v30 = vld [vmem:[#allocation5 + $0x88] sm:$0xff] }
  0x24   :  { %179 = vmatpush3.msra.mxu0 %v50_v9  ;;  %v41_v29 = vld [vmem:[#allocation5 + $0x10] sm:$0xff]  ;;  %v40_v31 = vld [vmem:[#allocation5 + $0x8] sm:$0xff]  ;;  %v55_v32 = vld [vmem:[#allocation5 + $0x80] sm:$0xff] }
  0x25   :  { %180 = vmatprep.subr.mxu0 %v65_v10  ;;  %v39_v33 = vld [vmem:[#allocation5] sm:$0xff] }
  0x26   :  { %181 = vmatpush3.msra.mxu0 %v49_v11 }
  0x27   :  { %182 = vmatprep.subr.mxu0 %v64_v12 }
  0x28   :  { %183 = vmatpush3.msra.mxu0 %v48_v14 }
  0x29   :  { %184 = vmatprep.subr.mxu0 %v63_v16 }
  0x2a   :  { %185 = vmatpush3.msra.mxu0 %v47_v17 }
  0x2b   :  { %186 = vmatprep.subr.mxu0 %v62_v18 }
  0x2c   :  { %187 = vmatpush3.msra.mxu0 %v46_v19 }
  0x2d   :  { %188 = vmatprep.subr.mxu0 %v61_v20 }
  0x2e   :  { %189 = vmatpush3.msra.mxu0 %v45_v21 }
  0x2f   :  { %190 = vmatprep.subr.mxu0 %v60_v22 }
  0x30   :  { %191 = vmatpush3.msra.mxu0 %v44_v23 }
  0x31   :  { %192 = vmatprep.subr.mxu0 %v59_v24 }
  0x32   :  { %193 = vmatpush3.msra.mxu0 %v43_v25 }
  0x33   :  { %194 = vmatprep.subr.mxu0 %v58_v26 }
  0x34   :  { %195 = vmatpush3.msra.mxu0 %v42_v27 }
  0x35   :  { %196 = vmatprep.subr.mxu0 %v57_v28 }
  0x36   :  { %197 = vmatpush3.msra.mxu0 %v41_v29 }
  0x37   :  { %198 = vmatprep.subr.mxu0 %v56_v30 }
  0x38   :  { %199 = vmatpush3.msra.mxu0 %v40_v31 }
  0x39   :  { %200 = vmatprep.subr.mxu0 %v55_v32 }
  0x3a   :  { %201 = vmatpush3.msra.mxu0 %v39_v33 }
  0x3b   :  { %147 = vmatmul.mubr.f32.vlgmr.msra.gmra.mxu0 %v169_v13 }
  0xfb   :  { %v202_v34 = vpop.f32.mrf.mxu0 }
  0xfd   :  { %v203_v35 = vpop.f32.mrf.mxu0 }
  0xfe   :  { %v204_v36 = vadd.f32 %v203_v35, %v202_v34 }
 0x100   :  { %152 = vst [vmem:[#allocation7] sm:$0x3] %v204_v36 }
 0x101   :  { %261 = shalt.err (!%p258_p0)
}
 0x102   :  { %162 = dma.vmem_to_hbm [thread:$0]  %s160_s1, 32, %s307_s2, [#allocation4]  }
 0x103   :  { %274 = dma.done.wait [#allocation4], 32  }
 0x104   :  { %275 = vsyncadd [#allocation4], 4294967264 }
 0x105   :  { %166 = vsyncpa [#allocation3], 1 }
 0x106   :  { %167 = vsyncpa [#allocation6], 1 }
 0x107   :  { %168 = vsyncpa [#allocation4], 1 }

</bundles_post_ra>
